<compile_context>
chip_gen: v5e
topology: v5e:2x2
jax: 0.10.0
libtpu: 0.0.40
codegen_flags: <defaults>
</compile_context>

<pallas_src>
import functools

import jax
import jax.numpy as jnp
from jax.experimental import pallas as pl
from jax.experimental.pallas import tpu as pltpu

_EPS = 1e-5


# --------------------------------------------------------------------------- #
# Kernels
# --------------------------------------------------------------------------- #
def _fused_kernel(tr_ref, tn_ref, gamma_ref, beta_ref, out_ref, *, inv_n, d):
    """Single-launch path: whole (B, D) inputs resident in VMEM.

    Uses centered (numerically stable) batch variance — exact match to the
    BatchNorm1d training-mode reference.
    """
    tr = tr_ref[...].astype(jnp.float32)
    tn = tn_ref[...].astype(jnp.float32)
    g = tr * tn  # gated term (see torch.kron note at top of file)

    def bn_seg(x, k):
        mean = jnp.sum(x, axis=0, keepdims=True) * inv_n
        xc = x - mean
        var = jnp.sum(xc * xc, axis=0, keepdims=True) * inv_n
        scale = gamma_ref[k:k + 1, :] * jax.lax.rsqrt(var + _EPS)
        return xc * scale + beta_ref[k:k + 1, :]

    out_ref[:, 0:d] = bn_seg(tr, 0).astype(out_ref.dtype)
    out_ref[:, d:2 * d] = bn_seg(g, 1).astype(out_ref.dtype)
    out_ref[:, 2 * d:3 * d] = bn_seg(tn, 2).astype(out_ref.dtype)


def _stats_kernel(tr_ref, tn_ref, gamma_ref, beta_ref,
                  scale_ref, shift_ref, sum_ref, sq_ref, *, inv_n):
    """Streaming pass 1: per-channel sum / sumsq -> folded BN scale/shift.

    Accumulators are (3, D): segment index on the sublane axis, so every access
    is lane-aligned for arbitrary D (no per-step lane concatenation).
    """
    i = pl.program_id(0)

    @pl.when(i == 0)
    def _():
        sum_ref[...] = jnp.zeros_like(sum_ref)
        sq_ref[...] = jnp.zeros_like(sq_ref)

    tr = tr_ref[...].astype(jnp.float32)
    tn = tn_ref[...].astype(jnp.float32)
    g = tr * tn

    # Batch-axis reductions go to the otherwise-idle XLU slot (kernel is
    # HBM-bound); per-segment partials land on distinct sublanes of (3, D).
    sum_ref[0:1, :] += jnp.sum(tr, axis=0, keepdims=True)
    sum_ref[1:2, :] += jnp.sum(g, axis=0, keepdims=True)
    sum_ref[2:3, :] += jnp.sum(tn, axis=0, keepdims=True)
    sq_ref[0:1, :] += jnp.sum(tr * tr, axis=0, keepdims=True)
    sq_ref[1:2, :] += jnp.sum(g * g, axis=0, keepdims=True)
    sq_ref[2:3, :] += jnp.sum(tn * tn, axis=0, keepdims=True)

    @pl.when(i == pl.num_programs(0) - 1)
    def _():
        # One-pass E[x^2] - E[x]^2 in f32 (documented trade-off vs centered).
        mean = sum_ref[...] * inv_n
        var = jnp.maximum(sq_ref[...] * inv_n - mean * mean, 0.0)  # biased var
        scale = gamma_ref[...] * jax.lax.rsqrt(var + _EPS)
        scale_ref[...] = scale
        shift_ref[...] = beta_ref[...] - mean * scale


def _normalize_kernel(tr_ref, tn_ref, scale_ref, shift_ref, out_ref, *, d):
    """Streaming pass 2: gate + folded BN; segment stores at lane offset k*D."""
    tr = tr_ref[...].astype(jnp.float32)
    tn = tn_ref[...].astype(jnp.float32)
    g = tr * tn

    out_ref[:, 0:d] = (tr * scale_ref[0:1, :] + shift_ref[0:1, :]).astype(out_ref.dtype)
    out_ref[:, d:2 * d] = (g * scale_ref[1:2, :] + shift_ref[1:2, :]).astype(out_ref.dtype)
    out_ref[:, 2 * d:3 * d] = (tn * scale_ref[2:3, :] + shift_ref[2:3, :]).astype(out_ref.dtype)


# --------------------------------------------------------------------------- #
# Host-side helpers
# --------------------------------------------------------------------------- #
def _vmem_budget_bytes():
    """Scoped VMEM budget: half the queried capacity, clamped to [16, 64] MiB."""
    cap = 0
    try:
        cap = int(getattr(pltpu.get_tpu_info(), "vmem_capacity_bytes", 0) or 0)
    except Exception:
        cap = 0
    if cap <= 0:
        cap = 64 * 1024 * 1024  # v7x-safe fallback (smallest physical VMEM)
    return int(max(16 * 1024 * 1024, min(cap // 2, 64 * 1024 * 1024)))


def _pick_row_tile(b, d, in_itemsize, out_itemsize, budget_bytes, max_rows=None):
    """Largest batch tile whose pass-2 live set fits the VMEM budget.

    Preserves the divisor invariant (tb | b) so no padded edge block ever leaks
    into the batch statistics.
    """
    # Pass-2 live set per row: two input tiles + one output tile, 2x buffered.
    per_row = 2 * (2 * d * in_itemsize + 3 * d * out_itemsize)
    fixed = 8 * 3 * d * 4  # resident (3, D) vectors (gamma/beta, scale/shift)
    tb_cap = max((budget_bytes - fixed) // max(per_row, 1), 8)
    if max_rows is not None:
        tb_cap = min(tb_cap, max_rows)
    if b <= tb_cap:
        return b  # whole-batch block: equals full dim -> always layout-legal
    # Sub-32-bit dtypes pack along sublanes: keep tiles sublane-pack aligned.
    sublane = 8 if in_itemsize >= 4 else (16 if in_itemsize == 2 else 32)
    start = int(tb_cap) - int(tb_cap) % sublane
    for tb in range(start, sublane - 1, -sublane):
        if b % tb == 0:
            return tb
    return b  # no aligned divisor: single whole-batch block (always legal)


def nonlinear_feature_gated_fusion(t_r, t_n, gamma, beta, *,
                                   allow_fused=True, max_rows_per_tile=None):
    """Fused forward: BatchNorm1d(cat([t_r, t_r*t_n, t_n], dim=1)), training mode."""
    assert t_r.ndim == 2 and t_r.shape == t_n.shape
    B, D = t_r.shape
    C = 3 * D
    assert gamma.shape == (C,) and beta.shape == (C,)

    out_dtype = t_r.dtype                    # dtype-matched dominant write
    in_bytes = jnp.dtype(t_r.dtype).itemsize
    out_bytes = jnp.dtype(out_dtype).itemsize
    gamma2 = gamma.reshape(3, D).astype(jnp.float32)
    beta2 = beta.reshape(3, D).astype(jnp.float32)

    budget = _vmem_budget_bytes()

    # ---- Fused single-launch path (single HBM read of the inputs). ----
    fused_bytes = (2 * B * D * in_bytes      # resident inputs
                   + 3 * B * D * 4           # f32 working set (three segments)
                   + B * C * out_bytes       # output block
                   + 4 * 3 * D * 4)          # gamma/beta + folded vectors
    if allow_fused and max_rows_per_tile is None and 2 * fused_bytes <= budget:
        return pl.pallas_call(
            functools.partial(_fused_kernel, inv_n=1.0 / B, d=D),
            out_shape=jax.ShapeDtypeStruct((B, C), out_dtype),
            compiler_params=pltpu.CompilerParams(vmem_limit_bytes=budget),
        )(t_r, t_n, gamma2, beta2)

    # ---- Streaming two-pass path. ----
    tb = _pick_row_tile(B, D, in_bytes, out_bytes, budget, max_rows_per_tile)
    grid = (pl.cdiv(B, tb),)

    act_spec = pl.BlockSpec((tb, D), lambda i: (i, 0))
    vec_spec = pl.BlockSpec((3, D), lambda i: (0, 0))  # resident across steps

    # Pass 1: batch statistics -> folded BN scale/shift.
    scale, shift = pl.pallas_call(
        functools.partial(_stats_kernel, inv_n=1.0 / B),
        out_shape=(jax.ShapeDtypeStruct((3, D), jnp.float32),
                   jax.ShapeDtypeStruct((3, D), jnp.float32)),
        grid_spec=pltpu.PrefetchScalarGridSpec(
            num_scalar_prefetch=0,
            grid=grid,
            in_specs=[act_spec, act_spec, vec_spec, vec_spec],
            out_specs=(vec_spec, vec_spec),
            scratch_shapes=[pltpu.VMEM((3, D), jnp.float32),
                            pltpu.VMEM((3, D), jnp.float32)]),
        compiler_params=pltpu.CompilerParams(
            dimension_semantics=("arbitrary",),
            vmem_limit_bytes=budget),
        cost_estimate=pl.CostEstimate(
            flops=7 * B * D, transcendentals=0,
            bytes_accessed=2 * B * D * in_bytes + 10 * C * 4),
    )(t_r, t_n, gamma2, beta2)

    # Pass 2: gate + normalize (megacore-parallel batch axis).
    return pl.pallas_call(
        functools.partial(_normalize_kernel, d=D),
        out_shape=jax.ShapeDtypeStruct((B, C), out_dtype),
        grid_spec=pltpu.PrefetchScalarGridSpec(
            num_scalar_prefetch=0,
            grid=grid,
            in_specs=[act_spec, act_spec, vec_spec, vec_spec],
            out_specs=pl.BlockSpec((tb, C), lambda i: (i, 0))),
        compiler_params=pltpu.CompilerParams(
            dimension_semantics=("parallel",),
            vmem_limit_bytes=budget),
        cost_estimate=pl.CostEstimate(
            flops=7 * B * D, transcendentals=0,
            bytes_accessed=2 * B * D * in_bytes + B * C * out_bytes + 4 * C * 4),
    )(t_r, t_n, scale, shift)


# --------------------------------------------------------------------------- #
# Reference & test
# --------------------------------------------------------------------------- #
def _reference(t_r, t_n, gamma, beta):
    concat = jnp.concatenate([t_r, t_r * t_n, t_n], axis=1).astype(jnp.float32)
    mean = concat.mean(0, keepdims=True)
    var = ((concat - mean) ** 2).mean(0, keepdims=True)
    out = (concat - mean) / jnp.sqrt(var + _EPS) * gamma + beta
    return out.astype(t_r.dtype)


if __name__ == "__main__":
    key = jax.random.PRNGKey(0)
    k_tr, k_tn, k_g, k_b = jax.random.split(key, 4)

    # --- Small shape: exercises the fused single-launch path. ---
    B, D = 8, 128
    t_r = jax.random.normal(k_tr, (B, D), dtype=jnp.float32)
    t_n = jax.random.normal(k_tn, (B, D), dtype=jnp.float32)
    gamma = 1.0 + 0.1 * jax.random.normal(k_g, (3 * D,), dtype=jnp.float32)
    beta = 0.1 * jax.random.normal(k_b, (3 * D,), dtype=jnp.float32)

    out = nonlinear_feature_gated_fusion(t_r, t_n, gamma, beta)
    out = jax.block_until_ready(out)
    ref = _reference(t_r, t_n, gamma, beta)
    assert out.shape == (B, 3 * D) and out.dtype == t_r.dtype
    assert jnp.allclose(out, ref, atol=1e-4, rtol=1e-4)

    # --- Larger batch, forced streaming two-pass path with a 4-step grid. ---
    B2 = 64
    t_r2 = jax.random.normal(k_tr, (B2, D), dtype=jnp.float32)
    t_n2 = jax.random.normal(k_tn, (B2, D), dtype=jnp.float32)
    out2 = nonlinear_feature_gated_fusion(
        t_r2, t_n2, gamma, beta, allow_fused=False, max_rows_per_tile=16)
    out2 = jax.block_until_ready(out2)
    ref2 = _reference(t_r2, t_n2, gamma, beta)
    assert out2.shape == (B2, 3 * D)
    assert jnp.allclose(out2, ref2, atol=1e-3, rtol=1e-3)

    print("KERNEL_OK")
</pallas_src>

<mosaic_0001>
module attributes {stable_mosaic.version = 11 : i64} {
  func.func @_fused_kernel(%arg0: memref<8x128xf32, #tpu.memory_space<vmem>>, %arg1: memref<8x128xf32, #tpu.memory_space<vmem>>, %arg2: memref<3x128xf32, #tpu.memory_space<vmem>>, %arg3: memref<3x128xf32, #tpu.memory_space<vmem>>, %arg4: memref<8x384xf32, #tpu.memory_space<vmem>>) attributes {dimension_semantics = [], scalar_prefetch = 0 : i64, scratch_operands = 0 : i64, tpu.core_type = #tpu.core_type<tc>} {
    %c0 = arith.constant 0 : index
    %c0_0 = arith.constant 0 : index
    %0 = vector.load %arg0[%c0, %c0_0] : memref<8x128xf32, #tpu.memory_space<vmem>>, vector<8x128xf32>
    %c0_1 = arith.constant 0 : index
    %c0_2 = arith.constant 0 : index
    %1 = vector.load %arg1[%c0_1, %c0_2] : memref<8x128xf32, #tpu.memory_space<vmem>>, vector<8x128xf32>
    %2 = arith.mulf %0, %1 : vector<8x128xf32>
    %cst = arith.constant dense<0.000000e+00> : vector<128xf32>
    %3 = vector.multi_reduction <add>, %0, %cst [0] : vector<8x128xf32> to vector<128xf32>
    %4 = vector.shape_cast %3 : vector<128xf32> to vector<1x128xf32>
    %cst_3 = arith.constant 1.250000e-01 : f32
    %5 = vector.broadcast %cst_3 : f32 to vector<1x128xf32>
    %6 = arith.mulf %4, %5 : vector<1x128xf32>
    %7 = vector.broadcast %6 : vector<1x128xf32> to vector<8x128xf32>
    %8 = arith.subf %0, %7 : vector<8x128xf32>
    %9 = arith.mulf %8, %8 : vector<8x128xf32>
    %cst_4 = arith.constant dense<0.000000e+00> : vector<128xf32>
    %10 = vector.multi_reduction <add>, %9, %cst_4 [0] : vector<8x128xf32> to vector<128xf32>
    %11 = vector.shape_cast %10 : vector<128xf32> to vector<1x128xf32>
    %cst_5 = arith.constant 1.250000e-01 : f32
    %12 = vector.broadcast %cst_5 : f32 to vector<1x128xf32>
    %13 = arith.mulf %11, %12 : vector<1x128xf32>
    %c0_6 = arith.constant 0 : index
    %c0_7 = arith.constant 0 : index
    %14 = vector.load %arg2[%c0_6, %c0_7] : memref<3x128xf32, #tpu.memory_space<vmem>>, vector<1x128xf32>
    %cst_8 = arith.constant 9.99999974E-6 : f32
    %15 = vector.broadcast %cst_8 : f32 to vector<1x128xf32>
    %16 = arith.addf %13, %15 : vector<1x128xf32>
    %17 = math.rsqrt %16 : vector<1x128xf32>
    %18 = arith.mulf %14, %17 : vector<1x128xf32>
    %19 = vector.broadcast %18 : vector<1x128xf32> to vector<8x128xf32>
    %20 = arith.mulf %8, %19 : vector<8x128xf32>
    %c0_9 = arith.constant 0 : index
    %c0_10 = arith.constant 0 : index
    %21 = vector.load %arg3[%c0_9, %c0_10] : memref<3x128xf32, #tpu.memory_space<vmem>>, vector<1x128xf32>
    %22 = vector.broadcast %21 : vector<1x128xf32> to vector<8x128xf32>
    %23 = arith.addf %20, %22 : vector<8x128xf32>
    %c0_11 = arith.constant 0 : index
    %c0_12 = arith.constant 0 : index
    %24 = vector.load %arg4[%c0_11, %c0_12] : memref<8x384xf32, #tpu.memory_space<vmem>>, vector<8x128xf32>
    tpu.vector_store %arg4[%c0_11, %c0_12], %23 {strides = array<i32>} : memref<8x384xf32, #tpu.memory_space<vmem>>, vector<8x128xf32>,
    %cst_13 = arith.constant dense<0.000000e+00> : vector<128xf32>
    %25 = vector.multi_reduction <add>, %2, %cst_13 [0] : vector<8x128xf32> to vector<128xf32>
    %26 = vector.shape_cast %25 : vector<128xf32> to vector<1x128xf32>
    %cst_14 = arith.constant 1.250000e-01 : f32
    %27 = vector.broadcast %cst_14 : f32 to vector<1x128xf32>
    %28 = arith.mulf %26, %27 : vector<1x128xf32>
    %29 = vector.broadcast %28 : vector<1x128xf32> to vector<8x128xf32>
    %30 = arith.subf %2, %29 : vector<8x128xf32>
    %31 = arith.mulf %30, %30 : vector<8x128xf32>
    %cst_15 = arith.constant dense<0.000000e+00> : vector<128xf32>
    %32 = vector.multi_reduction <add>, %31, %cst_15 [0] : vector<8x128xf32> to vector<128xf32>
    %33 = vector.shape_cast %32 : vector<128xf32> to vector<1x128xf32>
    %cst_16 = arith.constant 1.250000e-01 : f32
    %34 = vector.broadcast %cst_16 : f32 to vector<1x128xf32>
    %35 = arith.mulf %33, %34 : vector<1x128xf32>
    %c1 = arith.constant 1 : index
    %c0_17 = arith.constant 0 : index
    %36 = vector.load %arg2[%c1, %c0_17] : memref<3x128xf32, #tpu.memory_space<vmem>>, vector<1x128xf32>
    %cst_18 = arith.constant 9.99999974E-6 : f32
    %37 = vector.broadcast %cst_18 : f32 to vector<1x128xf32>
    %38 = arith.addf %35, %37 : vector<1x128xf32>
    %39 = math.rsqrt %38 : vector<1x128xf32>
    %40 = arith.mulf %36, %39 : vector<1x128xf32>
    %41 = vector.broadcast %40 : vector<1x128xf32> to vector<8x128xf32>
    %42 = arith.mulf %30, %41 : vector<8x128xf32>
    %c1_19 = arith.constant 1 : index
    %c0_20 = arith.constant 0 : index
    %43 = vector.load %arg3[%c1_19, %c0_20] : memref<3x128xf32, #tpu.memory_space<vmem>>, vector<1x128xf32>
    %44 = vector.broadcast %43 : vector<1x128xf32> to vector<8x128xf32>
    %45 = arith.addf %42, %44 : vector<8x128xf32>
    %c0_21 = arith.constant 0 : index
    %c128 = arith.constant 128 : index
    %46 = vector.load %arg4[%c0_21, %c128] : memref<8x384xf32, #tpu.memory_space<vmem>>, vector<8x128xf32>
    tpu.vector_store %arg4[%c0_21, %c128], %45 {strides = array<i32>} : memref<8x384xf32, #tpu.memory_space<vmem>>, vector<8x128xf32>,
    %cst_22 = arith.constant dense<0.000000e+00> : vector<128xf32>
    %47 = vector.multi_reduction <add>, %1, %cst_22 [0] : vector<8x128xf32> to vector<128xf32>
    %48 = vector.shape_cast %47 : vector<128xf32> to vector<1x128xf32>
    %cst_23 = arith.constant 1.250000e-01 : f32
    %49 = vector.broadcast %cst_23 : f32 to vector<1x128xf32>
    %50 = arith.mulf %48, %49 : vector<1x128xf32>
    %51 = vector.broadcast %50 : vector<1x128xf32> to vector<8x128xf32>
    %52 = arith.subf %1, %51 : vector<8x128xf32>
    %53 = arith.mulf %52, %52 : vector<8x128xf32>
    %cst_24 = arith.constant dense<0.000000e+00> : vector<128xf32>
    %54 = vector.multi_reduction <add>, %53, %cst_24 [0] : vector<8x128xf32> to vector<128xf32>
    %55 = vector.shape_cast %54 : vector<128xf32> to vector<1x128xf32>
    %cst_25 = arith.constant 1.250000e-01 : f32
    %56 = vector.broadcast %cst_25 : f32 to vector<1x128xf32>
    %57 = arith.mulf %55, %56 : vector<1x128xf32>
    %c2 = arith.constant 2 : index
    %c0_26 = arith.constant 0 : index
    %58 = vector.load %arg2[%c2, %c0_26] : memref<3x128xf32, #tpu.memory_space<vmem>>, vector<1x128xf32>
    %cst_27 = arith.constant 9.99999974E-6 : f32
    %59 = vector.broadcast %cst_27 : f32 to vector<1x128xf32>
    %60 = arith.addf %57, %59 : vector<1x128xf32>
    %61 = math.rsqrt %60 : vector<1x128xf32>
    %62 = arith.mulf %58, %61 : vector<1x128xf32>
    %63 = vector.broadcast %62 : vector<1x128xf32> to vector<8x128xf32>
    %64 = arith.mulf %52, %63 : vector<8x128xf32>
    %c2_28 = arith.constant 2 : index
    %c0_29 = arith.constant 0 : index
    %65 = vector.load %arg3[%c2_28, %c0_29] : memref<3x128xf32, #tpu.memory_space<vmem>>, vector<1x128xf32>
    %66 = vector.broadcast %65 : vector<1x128xf32> to vector<8x128xf32>
    %67 = arith.addf %64, %66 : vector<8x128xf32>
    %c0_30 = arith.constant 0 : index
    %c256 = arith.constant 256 : index
    %68 = vector.load %arg4[%c0_30, %c256] : memref<8x384xf32, #tpu.memory_space<vmem>>, vector<8x128xf32>
    tpu.vector_store %arg4[%c0_30, %c256], %67 {strides = array<i32>} : memref<8x384xf32, #tpu.memory_space<vmem>>, vector<8x128xf32>,
    return
  }
}

</mosaic_0001>

<bundles_post_ra>
// kernel: tpu_custom_call.1
= control target key start
LH: loop header
LB: loop body
LE: loop exit
PB: predicated region body
PF: predicated region fallthrough
CT: control target
= control target key end

     0   :  { %9 = vsyncpa [#allocation3], 0  ;;  %s402_s0 = inlined_call_operand.hbm [shape: f32[8,128], index: 0, kind: input, shape index: {}]   ;;  %s403_s1 = inlined_call_operand.hbm [shape: f32[8,128], index: 1, kind: input, shape index: {}]   ;;  %s404_s2 = inlined_call_operand.hbm [shape: f32[3,128], index: 2, kind: input, shape index: {}]   ;;  %s405_s3 = inlined_call_operand.hbm [shape: f32[3,128], index: 3, kind: input, shape index: {}]   ;;  %s406_s4 = inlined_call_operand.hbm [shape: f32[8,384], index: 4, kind: output, shape index: {}]  }
   0x1   :  { %10 = vsyncpa [#allocation6], 0 }
   0x2   :  { %11 = vsyncpa [#allocation9], 0  ;;  %s29_s17 = sshll.u32 %s403_s1, 4  ;;  %s30_s17 = int_to_ptr.hbm [resolvable:$true] %s29_s17 }
   0x3   :  { %12 = vsyncpa [#allocation4], 0  ;;  %s342_s18 = smov [#allocation5]   ;;  %s18_s22 = sshll.u32 %s402_s0, 4  ;;  %s19_s22 = int_to_ptr.hbm [resolvable:$true] %s18_s22 }
   0x4   :  { %s31_s19 = sshll.u32 %s342_s18, 4  ;;  %s343_s23 = smov [#allocation2]   ;;  %s32_s19 = int_to_ptr.vmem [resolvable:$true] %s31_s19 }
   0x5   :  { %34 = dma.hbm_to_vmem [thread:$0]  %s30_s17, 128, %s32_s19, [#allocation6]  }
   0x6   :  { %s20_s24 = sshll.u32 %s343_s23, 4  ;;  %s40_s27 = sshll.u32 %s404_s2, 4  ;;  %s21_s24 = int_to_ptr.vmem [resolvable:$true] %s20_s24  ;;  %s41_s27 = int_to_ptr.hbm [resolvable:$true] %s40_s27 }
   0x7   :  { %23 = dma.hbm_to_vmem [thread:$0]  %s19_s22, 128, %s21_s24, [#allocation3]  }
   0x8   :  { %s51_s29 = sshll.u32 %s405_s3, 4  ;;  %s344_s30 = smov [#allocation7]   ;;  %s52_s29 = int_to_ptr.hbm [resolvable:$true] %s51_s29 }
   0x9   :  { %s42_s5 = sshll.u32 %s344_s30, 4  ;;  %s345_s0 = smov [#allocation8]   ;;  %s43_s5 = int_to_ptr.vmem [resolvable:$true] %s42_s5 }
   0xa   :  { %45 = dma.hbm_to_vmem [thread:$0]  %s41_s27, 64, %s43_s5, [#allocation6]  }
   0xb   :  { %s53_s6 = sshll.u32 %s345_s0, 4  ;;  %s54_s6 = int_to_ptr.vmem [resolvable:$true] %s53_s6 }
   0xc   :  { %56 = dma.hbm_to_vmem [thread:$0]  %s52_s29, 64, %s54_s6, [#allocation9]  }
   0xd   :  { %334 = dma.done.wait [#allocation3], 128  }
   0xe   :  { %335 = vsyncadd [#allocation3], 4294967168 }
   0xf   :  { %336 = dma.done.wait [#allocation6], 192  }
  0x10   :  { %337 = vsyncadd [#allocation6], 4294967104 }
  0x11   :  { %338 = dma.done.wait [#allocation9], 64  }
  0x12   :  { %339 = vsyncadd [#allocation9], 4294967232  ;;  %v73_v0 = vld [vmem:[#allocation2] sm:$0xff]  ;;  %v74_v2 = vld [vmem:[#allocation5] sm:$0xff]  ;;  %s346_s2 = smov [#allocation10]   ;;  %s188_s9 = sshll.u32 %s406_s4, 4  ;;  %s189_s9 = int_to_ptr.hbm [resolvable:$true] %s188_s9 }
  0x13   :  { %v76_v1 = vrot.slane %v73_v0, 4  ;;  %v75_v3 = vmul.f32 %v74_v2, %v73_v0  ;;  %v146_v4 = vrot.slane %v74_v2, 4  ;;  %s186_s3 = sshll.u32 %s346_s2, 4  ;;  %s187_s3 = int_to_ptr.vmem [resolvable:$true] %s186_s3 }
  0x15   :  { %v77_v5 = vadd.f32 %v76_v1, %v73_v0  ;;  %v111_v6 = vrot.slane %v75_v3, 4  ;;  %v147_v7 = vadd.f32 %v146_v4, %v74_v2  ;;  %v92_v4 = vld [vmem:[#allocation7] sm:$0x1] }
  0x17   :  { %v78_v8 = vrot.slane %v77_v5, 2  ;;  %v112_v9 = vadd.f32 %v111_v6, %v75_v3  ;;  %v148_v10 = vrot.slane %v147_v7, 2 }
  0x19   :  { %v79_v11 = vadd.f32 %v78_v8, %v77_v5  ;;  %v113_v12 = vrot.slane %v112_v9, 2  ;;  %v149_v13 = vadd.f32 %v148_v10, %v147_v7  ;;  %v162_v7 = vld [vmem:[#allocation7 + $0x2] sm:$0x1] }
  0x1b   :  { %v80_v14 = vrot.slane %v79_v11, 1  ;;  %v114_v15 = vadd.f32 %v113_v12, %v112_v9  ;;  %v150_v16 = vrot.slane %v149_v13, 1 }
  0x1d   :  { %v81_v17 = vadd.f32 %v80_v14, %v79_v11  ;;  %v115_v18 = vrot.slane %v114_v15, 1  ;;  %v151_v19 = vadd.f32 %v150_v16, %v149_v13  ;;  %v127_v11 = vld [vmem:[#allocation7 + $0x1] sm:$0x1]  ;;  %v205_v16 = vld [vmem:[#allocation8] ss:$0 sm:$0xff] }
  0x1f   :  { %v82_v20 = vmul.f32 0.125, %v81_v17  ;;  %v116_v21 = vadd.f32 %v115_v18, %v114_v15  ;;  %v152_v22 = vmul.f32 0.125, %v151_v19 }
  0x21   :  { %v384_v23 = vsub.f32 %v73_v0, %v82_v20  ;;  %v117_v24 = vmul.f32 0.125, %v116_v21  ;;  %v386_v25 = vsub.f32 %v74_v2, %v152_v22  ;;  %v207_v20 = vld [vmem:[#allocation8 + $0x2] ss:$0 sm:$0xff] }
  0x23   :  { %v84_v26 = vmul.f32 %v384_v23, %v384_v23  ;;  %v390_v27 = vsub.f32 %v75_v3, %v117_v24  ;;  %v154_v28 = vmul.f32 %v386_v25, %v386_v25  ;;  %v206_v24 = vld [vmem:[#allocation8 + $0x1] ss:$0 sm:$0xff] }
  0x25   :  { %v85_v29 = vrot.slane %v84_v26, 4  ;;  %v119_v30 = vmul.f32 %v390_v27, %v390_v27  ;;  %v155_v31 = vrot.slane %v154_v28, 4 }
  0x27   :  { %v86_v32 = vadd.f32 %v85_v29, %v84_v26  ;;  %v120_v33 = vrot.slane %v119_v30, 4  ;;  %v156_v34 = vadd.f32 %v155_v31, %v154_v28 }
  0x29   :  { %v87_v35 = vrot.slane %v86_v32, 2  ;;  %v121_v36 = vadd.f32 %v120_v33, %v119_v30  ;;  %v157_v37 = vrot.slane %v156_v34, 2 }
  0x2b   :  { %v88_v38 = vadd.f32 %v87_v35, %v86_v32  ;;  %v122_v39 = vrot.slane %v121_v36, 2  ;;  %v158_v40 = vadd.f32 %v157_v37, %v156_v34 }
  0x2d   :  { %v89_v41 = vrot.slane %v88_v38, 1  ;;  %v123_v42 = vadd.f32 %v122_v39, %v121_v36  ;;  %v159_v43 = vrot.slane %v158_v40, 1 }
  0x2f   :  { %v90_v44 = vadd.f32 %v89_v41, %v88_v38  ;;  %v124_v45 = vrot.slane %v123_v42, 1  ;;  %v160_v46 = vadd.f32 %v159_v43, %v158_v40 }
  0x31   :  { %v91_v47 = vmul.f32 0.125, %v90_v44  ;;  %v125_v48 = vadd.f32 %v124_v45, %v123_v42  ;;  %v161_v49 = vmul.f32 0.125, %v160_v46 }
  0x33   :  { %v93_v50 = vadd.f32 1e-05, %v91_v47  ;;  %v126_v51 = vmul.f32 0.125, %v125_v48  ;;  %v163_v52 = vadd.f32 1e-05, %v161_v49 }
  0x35   :  { %208 = vrsqrt.f32 %v93_v50  ;;  %v128_v53 = vadd.f32 1e-05, %v126_v51  ;;  %vm100_vm0 = vweird.f32 %v93_v50  ;;  %vm170_vm2 = vweird.f32 %v163_v52 }
  0x36   :  { %210 = vrsqrt.f32 %v163_v52 }
  0x37   :  { %212 = vrsqrt.f32 %v128_v53  ;;  %vm135_vm5 = vweird.f32 %v128_v53 }
  0x3b   :  { %v209_v54 = vpop.eup %208 }
  0x3c   :  { %v211_v55 = vpop.eup %210  ;;  %v95_v56 = vmul.f32 %v209_v54, %v93_v50  ;;  %vm101_vm1 = vweird.f32 %v209_v54 }
  0x3d   :  { %v165_v57 = vmul.f32 %v211_v55, %v163_v52  ;;  %v213_v58 = vpop.eup %212  ;;  %vm171_vm3 = vweird.f32 %v211_v55  ;;  %vm102_vm4 = vmor %vm100_vm0, %vm101_vm1 }
  0x3e   :  { %v96_v59 = vmul.f32 %v209_v54, %v95_v56  ;;  %v130_v60 = vmul.f32 %v213_v58, %v128_v53  ;;  %vm136_vm6 = vweird.f32 %v213_v58  ;;  %vm172_vm7 = vmor %vm170_vm2, %vm171_vm3 }
  0x3f   :  { %v166_v61 = vmul.f32 %v211_v55, %v165_v57  ;;  %vm137_vm8 = vmor %vm135_vm5, %vm136_vm6 }
  0x40   :  { %v97_v62 = vmul.f32 0.5, %v96_v59  ;;  %v131_v63 = vmul.f32 %v213_v58, %v130_v60 }
  0x41   :  { %v167_v0 = vmul.f32 0.5, %v166_v61 }
  0x42   :  { %v98_v1 = vsub.f32 1.5, %v97_v62  ;;  %v132_v2 = vmul.f32 0.5, %v131_v63 }
  0x43   :  { %v168_v3 = vsub.f32 1.5, %v167_v0 }
  0x44   :  { %v99_v5 = vmul.f32 %v209_v54, %v98_v1  ;;  %v133_v6 = vsub.f32 1.5, %v132_v2 }
  0x45   :  { %v169_v8 = vmul.f32 %v211_v55, %v168_v3 }
  0x46   :  { %v103_v9 = vsel %vm102_vm4, %v209_v54, %v99_v5  ;;  %v134_v12 = vmul.f32 %v213_v58, %v133_v6 }
  0x47   :  { %v104_v10 = vmul.f32 %v103_v9, %v92_v4  ;;  %v173_v13 = vsel %vm172_vm7, %v211_v55, %v169_v8 }
  0x48   :  { %v174_v14 = vmul.f32 %v173_v13, %v162_v7  ;;  %v138_v17 = vsel %vm137_vm8, %v213_v58, %v134_v12 }
  0x49   :  { %v105_v15 = vperm.slane %v104_v10, 0  ;;  %v139_v18 = vmul.f32 %v138_v17, %v127_v11 }
  0x4a   :  { %v175_v19 = vperm.slane %v174_v14, 0 }
  0x4b   :  { %v106_v21 = vmul.f32 %v105_v15, %v384_v23  ;;  %v140_v22 = vperm.slane %v139_v18, 0 }
  0x4c   :  { %v176_v26 = vmul.f32 %v175_v19, %v386_v25 }
  0x4d   :  { %v109_v28 = vadd.f32 %v205_v16, %v106_v21  ;;  %v141_v29 = vmul.f32 %v140_v22, %v390_v27 }
  0x4e   :  { %v179_v30 = vadd.f32 %v207_v20, %v176_v26 }
  0x4f   :  { %110 = vst [vmem:[#allocation10] sm:$0xff] %v109_v28  ;;  %v144_v31 = vadd.f32 %v206_v24, %v141_v29 }
  0x50   :  { %180 = vst [vmem:[#allocation10 + $0x10] sm:$0xff] %v179_v30 }
  0x51   :  { %145 = vst [vmem:[#allocation10 + $0x8] sm:$0xff] %v144_v31 }
  0x52   :  { %191 = dma.vmem_to_hbm [thread:$0]  %s187_s3, 384, %s189_s9, [#allocation4]  }
  0x53   :  { %340 = dma.done.wait [#allocation4], 384  }
  0x54   :  { %341 = vsyncadd [#allocation4], 4294966912 }
  0x55   :  { %196 = vsyncpa [#allocation3], 1 }
  0x56   :  { %197 = vsyncpa [#allocation6], 1 }
  0x57   :  { %198 = vsyncpa [#allocation9], 1 }
  0x58   :  { %199 = vsyncpa [#allocation4], 1 }

</bundles_post_ra>
